<compile_context>
chip_gen: v7x
topology: tpu7x:2x2x1
jax: 0.10.0
libtpu: 0.0.40
codegen_flags: <defaults>
</compile_context>

<pallas_src>
import functools

import jax
import jax.numpy as jnp
from jax.experimental import pallas as pl
from jax.experimental.pallas import tpu as pltpu


def _round_up(a, b):
    return (a + b - 1) // b * b


def _cdiv(a, b):
    return -(-a // b)


def _default_vmem_limit_bytes():
    """Per-generation scoped-VMEM limit: 3/4 of physical VMEM."""
    try:
        cap = int(pltpu.get_tpu_info().vmem_capacity_bytes)
    except Exception:
        cap = 64 * 1024 * 1024  # conservative fallback (v7x physical VMEM)
    return (cap * 3) // 4       # 96 MiB on 128-MiB chips, 48 MiB on 64-MiB chips


def _mask_tail_rows(row_loss, n_rows):
    """Zero contributions of rows past the true batch size.

    Partial / duplicated tail blocks contain garbage (possibly NaN/Inf), so this
    must be a where-select on the per-row contribution, never a multiply.
    """
    tile_n = row_loss.shape[0]
    row_ids = jax.lax.broadcasted_iota(jnp.int32, (tile_n, 1), 0)
    block = pl.program_id(0) * pl.num_programs(1) + pl.program_id(1)  # unclamped
    global_row = block * tile_n + row_ids
    return jnp.where(global_row < n_rows, row_loss, 0.0)


def _soft_ce_soft_kernel(n_rows, x_ref, t_ref, o_ref, acc_ref):
    """Soft-target path: x (tile_n, C), t (tile_n, C).

    Uses sum(-t * log_softmax(x)) == (m + lse) * sum(t) - sum(t * x), so neither
    log_softmax nor -t*logp is ever materialized as a (tile_n, C) f32 temporary.
    """
    i = pl.program_id(1)

    @pl.when(i == 0)
    def _():
        acc_ref[...] = jnp.zeros_like(acc_ref)

    x = x_ref[...].astype(jnp.float32)            # (tile_n, C)
    t = t_ref[...].astype(jnp.float32)            # (tile_n, C)

    m = jnp.max(x, axis=-1, keepdims=True)
    lse = jnp.log(jnp.sum(jnp.exp(x - m), axis=-1, keepdims=True))
    t_sum = jnp.sum(t, axis=-1, keepdims=True)
    tx_sum = jnp.sum(t * x, axis=-1, keepdims=True)
    row_loss = (m + lse) * t_sum - tx_sum         # (tile_n, 1)

    acc_ref[...] += _mask_tail_rows(row_loss, n_rows)

    @pl.when(i == pl.num_programs(1) - 1)
    def _():
        # broadcast the per-chunk partial sum into the lane-dense output block;
        # the wrapper reads one element per chunk.
        o_ref[...] = jnp.zeros_like(o_ref) + jnp.sum(acc_ref[...])


def _soft_ce_label_kernel(n_rows, x_ref, lab_ref, o_ref, acc_ref):
    """Integer-label path: x (tile_n, C), labels (tile_n, 1) int32.

    loss_row = (m + lse) - x[label]; log_softmax is never materialized.
    """
    i = pl.program_id(1)

    @pl.when(i == 0)
    def _():
        acc_ref[...] = jnp.zeros_like(acc_ref)

    x = x_ref[...].astype(jnp.float32)            # (tile_n, C)
    lab = lab_ref[...]                            # (tile_n, 1) int32

    m = jnp.max(x, axis=-1, keepdims=True)
    lse = jnp.log(jnp.sum(jnp.exp(x - m), axis=-1, keepdims=True))
    class_ids = jax.lax.broadcasted_iota(jnp.int32, x.shape, 1)
    x_at_lab = jnp.sum(jnp.where(class_ids == lab, x, 0.0), axis=-1, keepdims=True)
    row_loss = (m + lse) - x_at_lab               # (tile_n, 1)

    acc_ref[...] += _mask_tail_rows(row_loss, n_rows)

    @pl.when(i == pl.num_programs(1) - 1)
    def _():
        o_ref[...] = jnp.zeros_like(o_ref) + jnp.sum(acc_ref[...])


def soft_target_cross_entropy(
    x,
    target,
    *,
    num_chunks=2,                       # leading "parallel" axis (multiple of 2 for v7x)
    target_step_bytes=8 * 1024 * 1024,  # aim for MiB-scale streamed tiles per step
    vmem_limit_bytes=None,              # default: per-generation via get_tpu_info()
):
    """x: (N, C) logits (f32/bf16); target: (N, C) soft labels or (N,) int class ids."""
    assert x.ndim == 2, "expected (N, C) logits"
    n, c = x.shape
    int_labels = (target.ndim == 1)

    if vmem_limit_bytes is None:
        vmem_limit_bytes = _default_vmem_limit_bytes()
    vmem_limit_bytes = int(vmem_limit_bytes)

    # --- VMEM-budgeted row tile: streamed tiles (double-buffered) + f32 temps -----
    c128 = _round_up(c, 128)                      # lane-layout footprint of one row
    x_row = c128 * x.dtype.itemsize
    if int_labels:
        t_row = 128 * 4                           # (tile_n, 1) i32 pads lanes to 128
    else:
        t_row = c128 * target.dtype.itemsize
    wide_f32_temps = 4 * c128 * 4                 # x.astype(f32), exp(x-m), t f32, t*x
    narrow_temps = 8 * 128 * 4                    # acc + per-row scalars (m, lse, sums, ...)
    bytes_per_row = 2 * (x_row + t_row) + wide_f32_temps + narrow_temps

    budget = int(vmem_limit_bytes * 0.7)          # headroom for output blocks / compiler scratch
    tile_n = budget // bytes_per_row
    tile_n = min(tile_n, max(8, target_step_bytes // max(1, x_row)))
    tile_n = max(8, (tile_n // 8) * 8)
    tile_n = int(min(tile_n, _round_up(n, 8)))

    # --- grid: (chunks, steps); clamp block indices so DMAs never start fully OOB --
    n_tiles = _cdiv(n, tile_n)
    num_chunks = int(max(1, min(num_chunks, n_tiles)))
    steps = _cdiv(n_tiles, num_chunks)
    last_block = n_tiles - 1
    row_map = lambda p, i: (jnp.minimum(p * steps + i, last_block), 0)

    if int_labels:
        second_arg = target.astype(jnp.int32).reshape(n, 1)
        second_spec = pl.BlockSpec((tile_n, 1), row_map)
        kernel = functools.partial(_soft_ce_label_kernel, n)
    else:
        second_arg = target
        second_spec = pl.BlockSpec((tile_n, c), row_map)
        kernel = functools.partial(_soft_ce_soft_kernel, n)

    partial_sums = pl.pallas_call(
        kernel,
        out_shape=jax.ShapeDtypeStruct((num_chunks, 8, 128), jnp.float32),
        grid_spec=pltpu.PrefetchScalarGridSpec(
            num_scalar_prefetch=0,
            grid=(num_chunks, steps),
            in_specs=[
                pl.BlockSpec((tile_n, c), row_map),
                second_spec,
            ],
            out_specs=pl.BlockSpec((1, 8, 128), lambda p, i: (p, 0, 0)),
            scratch_shapes=[pltpu.VMEM((tile_n, 1), jnp.float32)],
        ),
        compiler_params=pltpu.CompilerParams(
            dimension_semantics=("parallel", "arbitrary"),
            vmem_limit_bytes=vmem_limit_bytes,
        ),
    )(x, second_arg)

    # every element of chunk p's (8,128) block equals that chunk's partial sum
    return jnp.sum(partial_sums[:, 0, 0]) / jnp.float32(n)


def _reference(x, target):
    if target.ndim == 1:
        target = jax.nn.one_hot(target, x.shape[1], dtype=jnp.float32)
    logp = jax.nn.log_softmax(x.astype(jnp.float32), axis=-1)
    return jnp.mean(jnp.sum(-target.astype(jnp.float32) * logp, axis=-1))


if __name__ == "__main__":
    key = jax.random.PRNGKey(0)
    k1, k2, k3 = jax.random.split(key, 3)

    N, C = 16, 32  # small synthetic shapes
    x = jax.random.normal(k1, (N, C), dtype=jnp.float32)
    # soft targets: a random distribution per row
    target = jax.nn.softmax(jax.random.normal(k2, (N, C), dtype=jnp.float32), axis=-1)

    loss = jax.block_until_ready(soft_target_cross_entropy(x, target))
    ref = _reference(x, target)
    assert jnp.allclose(loss, ref, rtol=1e-5, atol=1e-5), (loss, ref)

    # integer-label path: labels streamed as int32, one-hot built in-kernel
    labels = jax.random.randint(k2, (N,), 0, C)
    loss2 = jax.block_until_ready(soft_target_cross_entropy(x, labels))
    ref2 = _reference(x, labels)
    assert jnp.allclose(loss2, ref2, rtol=1e-5, atol=1e-5), (loss2, ref2)

    # ragged / unaligned shapes + bf16 inputs (exercises in-kernel tail masking + upcast)
    N3, C3 = 10, 40
    x3 = jax.random.normal(k3, (N3, C3), dtype=jnp.bfloat16)
    t3 = jax.nn.softmax(
        jax.random.normal(k1, (N3, C3), dtype=jnp.float32), axis=-1
    ).astype(jnp.bfloat16)
    loss3 = jax.block_until_ready(soft_target_cross_entropy(x3, t3))
    ref3 = _reference(x3, t3)
    assert jnp.allclose(loss3, ref3, rtol=1e-3, atol=1e-3), (loss3, ref3)

    print("KERNEL_OK")
</pallas_src>

<mosaic_0001>
module attributes {stable_mosaic.version = 11 : i64} {
  func.func @_soft_ce_soft_kernel(%arg0: i32, %arg1: i32, %arg2: memref<16x32xf32, #tpu.memory_space<vmem>>, %arg3: memref<16x32xf32, #tpu.memory_space<vmem>>, %arg4: memref<1x8x128xf32, #tpu.memory_space<vmem>>, %arg5: memref<16x1xf32, #tpu.memory_space<vmem>>) attributes {dimension_semantics = [#tpu.dimension_semantics<parallel>, #tpu.dimension_semantics<arbitrary>], iteration_bounds = array<i64: 1, 1>, scalar_prefetch = 0 : i64, scratch_operands = 1 : i64, tpu.core_type = #tpu.core_type<tc>, window_params = [{transform_indices = @transform_0, window_bounds = array<i64: 16, 32>}, {transform_indices = @transform_1, window_bounds = array<i64: 16, 32>}, {transform_indices = @transform_2, window_bounds = array<i64: 1, 8, 128>}]} {
    %c0_i32 = arith.constant 0 : i32
    %0 = arith.cmpi eq, %arg1, %c0_i32 : i32
    %1 = arith.extui %0 : i1 to i32
    %c0_i32_0 = arith.constant 0 : i32
    %2 = arith.cmpi ne, %1, %c0_i32_0 : i32
    scf.if %2 {
      %cst_15 = arith.constant 0.000000e+00 : f32
      %37 = vector.broadcast %cst_15 : f32 to vector<16x1xf32>
      %c0_16 = arith.constant 0 : index
      %c0_17 = arith.constant 0 : index
      %38 = vector.load %arg5[%c0_16, %c0_17] : memref<16x1xf32, #tpu.memory_space<vmem>>, vector<16x1xf32>
      tpu.vector_store %arg5[%c0_16, %c0_17], %37 {strides = array<i32>} : memref<16x1xf32, #tpu.memory_space<vmem>>, vector<16x1xf32>,
    } else {
    }
    %c0 = arith.constant 0 : index
    %c0_1 = arith.constant 0 : index
    %3 = vector.load %arg2[%c0, %c0_1] : memref<16x32xf32, #tpu.memory_space<vmem>>, vector<16x32xf32>
    %c0_2 = arith.constant 0 : index
    %c0_3 = arith.constant 0 : index
    %4 = vector.load %arg3[%c0_2, %c0_3] : memref<16x32xf32, #tpu.memory_space<vmem>>, vector<16x32xf32>
    %cst = arith.constant dense<0xFF800000> : vector<16xf32>
    %5 = vector.multi_reduction <maximumf>, %3, %cst [1] : vector<16x32xf32> to vector<16xf32>
    %6 = vector.shape_cast %5 : vector<16xf32> to vector<16x1xf32>
    %7 = vector.broadcast %6 : vector<16x1xf32> to vector<16x32xf32>
    %8 = arith.subf %3, %7 : vector<16x32xf32>
    %9 = math.exp %8 : vector<16x32xf32>
    %cst_4 = arith.constant dense<0.000000e+00> : vector<16xf32>
    %10 = vector.multi_reduction <add>, %9, %cst_4 [1] : vector<16x32xf32> to vector<16xf32>
    %11 = vector.shape_cast %10 : vector<16xf32> to vector<16x1xf32>
    %12 = math.log %11 : vector<16x1xf32>
    %cst_5 = arith.constant dense<0.000000e+00> : vector<16xf32>
    %13 = vector.multi_reduction <add>, %4, %cst_5 [1] : vector<16x32xf32> to vector<16xf32>
    %14 = vector.shape_cast %13 : vector<16xf32> to vector<16x1xf32>
    %15 = arith.mulf %4, %3 : vector<16x32xf32>
    %cst_6 = arith.constant dense<0.000000e+00> : vector<16xf32>
    %16 = vector.multi_reduction <add>, %15, %cst_6 [1] : vector<16x32xf32> to vector<16xf32>
    %17 = vector.shape_cast %16 : vector<16xf32> to vector<16x1xf32>
    %18 = arith.addf %6, %12 : vector<16x1xf32>
    %19 = arith.mulf %18, %14 : vector<16x1xf32>
    %20 = arith.subf %19, %17 : vector<16x1xf32>
    %c0_7 = arith.constant 0 : index
    %c0_8 = arith.constant 0 : index
    %21 = vector.load %arg5[%c0_7, %c0_8] : memref<16x1xf32, #tpu.memory_space<vmem>>, vector<16x1xf32>
    %22 = tpu.iota {dimensions = array<i32: 0>} : vector<16x1xi32>
    %c1_i32 = arith.constant 1 : i32
    %23 = arith.muli %arg0, %c1_i32 : i32
    %24 = arith.addi %23, %arg1 : i32
    %c16_i32 = arith.constant 16 : i32
    %25 = arith.muli %24, %c16_i32 : i32
    %26 = vector.broadcast %25 : i32 to vector<16x1xi32>
    %27 = arith.addi %26, %22 : vector<16x1xi32>
    %c16_i32_9 = arith.constant 16 : i32
    %28 = vector.broadcast %c16_i32_9 : i32 to vector<16x1xi32>
    %29 = arith.cmpi slt, %27, %28 : vector<16x1xi32>
    %cst_10 = arith.constant 0.000000e+00 : f32
    %30 = vector.broadcast %cst_10 : f32 to vector<16x1xf32>
    %31 = arith.select %29, %20, %30 : vector<16x1xi1>, vector<16x1xf32>
    %32 = arith.addf %21, %31 : vector<16x1xf32>
    %c0_11 = arith.constant 0 : index
    %c0_12 = arith.constant 0 : index
    %33 = vector.load %arg5[%c0_11, %c0_12] : memref<16x1xf32, #tpu.memory_space<vmem>>, vector<16x1xf32>
    tpu.vector_store %arg5[%c0_11, %c0_12], %32 {strides = array<i32>} : memref<16x1xf32, #tpu.memory_space<vmem>>, vector<16x1xf32>,
    %c0_i32_13 = arith.constant 0 : i32
    %34 = arith.cmpi eq, %arg1, %c0_i32_13 : i32
    %35 = arith.extui %34 : i1 to i32
    %c0_i32_14 = arith.constant 0 : i32
    %36 = arith.cmpi ne, %35, %c0_i32_14 : i32
    scf.if %36 {
      %cst_15 = arith.constant 0.000000e+00 : f32
      %37 = vector.broadcast %cst_15 : f32 to vector<1x8x128xf32>
      %c0_16 = arith.constant 0 : index
      %c0_17 = arith.constant 0 : index
      %38 = vector.load %arg5[%c0_16, %c0_17] : memref<16x1xf32, #tpu.memory_space<vmem>>, vector<16x1xf32>
      %39 = vector.shape_cast %38 : vector<16x1xf32> to vector<1x16x1xf32>
      %cst_18 = arith.constant dense<0.000000e+00> : vector<1xf32>
      %40 = vector.multi_reduction <add>, %39, %cst_18 [1, 2] : vector<1x16x1xf32> to vector<1xf32>
      %41 = vector.shape_cast %40 : vector<1xf32> to vector<1x1x1xf32>
      %42 = vector.extract %41[0, 0, 0] : f32 from vector<1x1x1xf32>
      %43 = vector.broadcast %42 : f32 to vector<1x8x128xf32>
      %44 = arith.addf %37, %43 : vector<1x8x128xf32>
      %c0_19 = arith.constant 0 : index
      %c0_20 = arith.constant 0 : index
      %c0_21 = arith.constant 0 : index
      %45 = vector.load %arg4[%c0_19, %c0_20, %c0_21] : memref<1x8x128xf32, #tpu.memory_space<vmem>>, vector<1x8x128xf32>
      tpu.vector_store %arg4[%c0_19, %c0_20, %c0_21], %44 {strides = array<i32>} : memref<1x8x128xf32, #tpu.memory_space<vmem>>, vector<1x8x128xf32>,
    } else {
    }
    return
  }
  func.func @transform_0(%arg0: i32, %arg1: i32) -> (i32, i32) {
    %c1_i32 = arith.constant 1 : i32
    %0 = arith.muli %arg0, %c1_i32 : i32
    %1 = arith.addi %0, %arg1 : i32
    %c0_i32 = arith.constant 0 : i32
    %2 = arith.minsi %1, %c0_i32 : i32
    %c0_i32_0 = arith.constant 0 : i32
    %c0_i32_1 = arith.constant 0 : i32
    return %2, %c0_i32_0 : i32, i32
  }
  func.func @transform_1(%arg0: i32, %arg1: i32) -> (i32, i32) {
    %c1_i32 = arith.constant 1 : i32
    %0 = arith.muli %arg0, %c1_i32 : i32
    %1 = arith.addi %0, %arg1 : i32
    %c0_i32 = arith.constant 0 : i32
    %2 = arith.minsi %1, %c0_i32 : i32
    %c0_i32_0 = arith.constant 0 : i32
    %c0_i32_1 = arith.constant 0 : i32
    return %2, %c0_i32_0 : i32, i32
  }
  func.func @transform_2(%arg0: i32, %arg1: i32) -> (i32, i32, i32) {
    %c0_i32 = arith.constant 0 : i32
    %c0_i32_0 = arith.constant 0 : i32
    %c0_i32_1 = arith.constant 0 : i32
    return %arg0, %c0_i32, %c0_i32_0 : i32, i32, i32
  }
}

</mosaic_0001>

<bundles_post_ra>
// kernel: tpu_custom_call.1
= control target key start
LH: loop header
LB: loop body
LE: loop exit
PB: predicated region body
PF: predicated region fallthrough
CT: control target
= control target key end

     0   :  { %7 = vsyncpa [#allocation4], 0  ;;  %s332_s0 = inlined_call_operand.hbm [shape: f32[16,32], index: 0, kind: input, shape index: {}]   ;;  %s333_s1 = inlined_call_operand.hbm [shape: f32[16,32], index: 1, kind: input, shape index: {}]   ;;  %s334_s2 = inlined_call_operand.hbm [shape: f32[1,8,128], index: 2, kind: output, shape index: {}]  }
   0x1   :  { %8 = vsyncpa [#allocation7], 0 }
   0x2   :  { %9 = vsyncpa [#allocation5], 0  ;;  %s261_s9 = smov [#allocation3]   ;;  %s189_s13 = scalar_lea.hbm %s332_s0, 256 }
   0x3   :  { %s21_s10 = sshll.u32 %s261_s9, 4  ;;  %p190_p0 = scmp.ne.s32.totalorder %s332_s0, %s189_s13  ;;  %s22_s10 = int_to_ptr.vmem [resolvable:$true] %s21_s10 }
   0x4   :  { %p193_p1 = scmp.lt.u32.totalorder %s189_s13, %s332_s0 }
   0x6   :  { %p195_p2 = pnand %p193_p1, %p190_p0 }
   0x8   :  { %198 = shalt.err (!%p195_p2)
}
   0x9   :  { %s199_s18 = scalar_lea.vmem %s22_s10, 256  ;;  %p204_p4 = scmp.lt.s32.totalorder %s22_s10, %s22_s10 }
   0xa   :  { %p200_p3 = scmp.ne.s32.totalorder %s22_s10, %s199_s18  ;;  %p205_p5 = scmp.lt.s32.totalorder %s199_s18, %s199_s18 }
   0xc   :  { %p206_p6 = por %p205_p5, %p204_p4 }
   0xe   :  { %p207_p7 = pnand %p206_p6, %p200_p3 }
  0x10   :  { %210 = shalt.err (!%p207_p7)
}
  0x11   :  { %s262_s19 = smov 128   ;;  %s263_s20 = smov 8  }
  0x12   :  { %27 = dma.hbm_to_vmem [thread:$0]  %s332_s0, 256, %s22_s10, [#allocation4], %s262_s19, %s262_s19, %s263_s20  }
  0x13   :  { %s264_s23 = smov [#allocation6]   ;;  %s211_s27 = scalar_lea.hbm %s333_s1, 256 }
  0x14   :  { %s39_s24 = sshll.u32 %s264_s23, 4  ;;  %p212_p8 = scmp.ne.s32.totalorder %s333_s1, %s211_s27  ;;  %s40_s24 = int_to_ptr.vmem [resolvable:$true] %s39_s24 }
  0x15   :  { %p215_p9 = scmp.lt.u32.totalorder %s211_s27, %s333_s1 }
  0x17   :  { %p217_p10 = pnand %p215_p9, %p212_p8 }
  0x19   :  { %220 = shalt.err (!%p217_p10)
}
  0x1a   :  { %s221_s4 = scalar_lea.vmem %s40_s24, 256  ;;  %p226_p12 = scmp.lt.s32.totalorder %s40_s24, %s40_s24 }
  0x1b   :  { %p222_p11 = scmp.ne.s32.totalorder %s40_s24, %s221_s4  ;;  %p227_p13 = scmp.lt.s32.totalorder %s221_s4, %s221_s4 }
  0x1d   :  { %p228_p0 = por %p227_p13, %p226_p12 }
  0x1f   :  { %p229_p1 = pnand %p228_p0, %p222_p11 }
  0x21   :  { %232 = shalt.err (!%p229_p1)
}
  0x22   :  { %45 = dma.hbm_to_vmem [thread:$0]  %s333_s1, 256, %s40_s24, [#allocation7], %s262_s19, %s262_s19, %s263_s20  }
  0x23   :  { %255 = dma.done.wait [#allocation4], 256  }
  0x24   :  { %256 = vsyncadd [#allocation4], 4294967040 }
  0x25   :  { %257 = dma.done.wait [#allocation7], 256  }
  0x26   :  { %258 = vsyncadd [#allocation7], 4294967040  ;;  %vm71_vm0 = vcmask 261120   ;;  %v67_v0 = vld [vmem:[#allocation3] sm:$0xff]  ;;  %v68_v1 = vld [vmem:[#allocation3 + $0x8] sm:$0xff]  ;;  %vm64_vm1 = vcmask 7168  }
  0x27   :  { %v72_v2 = vsel %vm71_vm0, %v67_v0, -inf  ;;  %v75_v3 = vsel %vm71_vm0, %v68_v1, -inf  ;;  %v69_v4 = vld [vmem:[#allocation6] sm:$0xff]  ;;  %v70_v17 = vld [vmem:[#allocation6 + $0x8] sm:$0xff]  ;;  %v265_v22 = vmov 0.0   ;;  %s266_s1 = smov [#allocation8]  }
  0x28   :  { %73 = vmax.xlane.f32.xlu0 %v72_v2  ;;  %v94_v5 = vsel %vm71_vm0, %v69_v4, 0.0  ;;  %v100_v6 = vmul.f32 %v69_v4, %v67_v0  ;;  %v97_v19 = vsel %vm71_vm0, %v70_v17, 0.0  ;;  %v101_v20 = vmul.f32 %v70_v17, %v68_v1  ;;  %65 = vst.msk [vmem:[#allocation2] sm:$0xff] %vm64_vm1, %v265_v22  ;;  %66 = vst.msk [vmem:[#allocation2 + $0x8] sm:$0xff] %vm64_vm1, %v265_v22  ;;  %s159_s6 = sshll.u32 %s266_s1, 4  ;;  %s160_s6 = int_to_ptr.vmem [resolvable:$true] %s159_s6 }
  0x29   :  { %s233_s8 = scalar_lea.vmem %s160_s6, 128  ;;  %p238_p3 = scmp.lt.s32.totalorder %s160_s6, %s160_s6 }
  0x2a   :  { %v102_v7 = vsel %vm71_vm0, %v100_v6, 0.0  ;;  %v105_v21 = vsel %vm71_vm0, %v101_v20, 0.0  ;;  %p234_p2 = scmp.ne.s32.totalorder %s160_s6, %s233_s8  ;;  %p239_p4 = scmp.lt.s32.totalorder %s233_s8, %s233_s8 }
  0x2c   :  { %76 = vmax.xlane.f32.xlu0 %v75_v3  ;;  %p240_p5 = por %p239_p4, %p238_p3 }
  0x2e   :  { %p241_p6 = pnand %p240_p5, %p234_p2 }
  0x2f   :  { %v114_v34 = vld [vmem:[#allocation2] sm:$0xff]  ;;  %v115_v40 = vld [vmem:[#allocation2 + $0x8] sm:$0xff] }
  0x30   :  { %95 = vadd.xlane.f32.xlu0 %v94_v5 }
  0x34   :  { %103 = vadd.xlane.f32.xlu0 %v102_v7 }
  0xb5   :  { %v74_v8 = vpop.xlane.xlu0 %73 }
  0xb6   :  { %v78_v9 = vsub.f32 %v67_v0, %v74_v8 }
  0xb8   :  { %v80_v10 = vmul.f32 1.442695, %v78_v9 }
  0xb9   :  { %v77_v11 = vpop.xlane.xlu0 %76 }
  0xba   :  { %181 = vpow2.f32 %v80_v10  ;;  %v79_v12 = vsub.f32 %v68_v1, %v77_v11 }
  0xbc   :  { %v82_v13 = vmul.f32 1.442695, %v79_v12 }
  0xbd   :  { %v96_v25 = vpop.xlane.xlu0 %95 }
  0xbe   :  { %183 = vpow2.f32 %v82_v13 }
  0xc1   :  { %v104_v31 = vpop.xlane.xlu0 %103 }
  0xc4   :  { %v182_v14 = vpop.eup %181 }
  0xc5   :  { %v84_v15 = vsel %vm71_vm0, %v182_v14, 0.0 }
  0xc6   :  { %85 = vadd.xlane.f32.xlu1 %v84_v15 }
  0xc8   :  { %v184_v16 = vpop.eup %183 }
  0xc9   :  { %v87_v18 = vsel %vm71_vm0, %v184_v16, 0.0 }
  0xca   :  { %88 = vadd.xlane.f32.xlu1 %v87_v18 }
  0xce   :  { %98 = vadd.xlane.f32.xlu1 %v97_v19 }
  0xd2   :  { %106 = vadd.xlane.f32.xlu1 %v105_v21 }
 0x153   :  { %v86_v23 = vpop.xlane.xlu1 %85 }
 0x154   :  { %185 = vlog2.f32 %v86_v23 }
 0x157   :  { %v89_v24 = vpop.xlane.xlu1 %88 }
 0x158   :  { %187 = vlog2.f32 %v89_v24 }
 0x15b   :  { %v99_v28 = vpop.xlane.xlu1 %98 }
 0x15e   :  { %v186_v26 = vpop.eup %185 }
 0x15f   :  { %v91_v27 = vmul.f32 0.6931472, %v186_v26  ;;  %v107_v37 = vpop.xlane.xlu1 %106 }
 0x161   :  { %v108_v29 = vadd.f32 %v91_v27, %v74_v8 }
 0x162   :  { %v188_v30 = vpop.eup %187 }
 0x163   :  { %v93_v32 = vmul.f32 0.6931472, %v188_v30  ;;  %v110_v33 = vmul.f32 %v108_v29, %v96_v25 }
 0x165   :  { %v109_v35 = vadd.f32 %v93_v32, %v77_v11  ;;  %v112_v36 = vsub.f32 %v110_v33, %v104_v31 }
 0x167   :  { %v111_v38 = vmul.f32 %v109_v35, %v99_v28  ;;  %v128_v39 = vadd.f32 %v114_v34, %v112_v36 }
 0x169   :  { %131 = vst.msk [vmem:[#allocation2] sm:$0xff] %vm64_vm1, %v128_v39  ;;  %v113_v41 = vsub.f32 %v111_v38, %v107_v37 }
 0x16b   :  { %v129_v42 = vadd.f32 %v115_v40, %v113_v41 }
 0x16d   :  { %132 = vst.msk [vmem:[#allocation2 + $0x8] sm:$0xff] %vm64_vm1, %v129_v42 }
 0x170   :  { %v136_v43 = vld [vmem:[#allocation2] sm:$0xff] }
 0x171   :  { %v138_v45 = vsel %vm64_vm1, %v136_v43, 0.0 }
 0x174   :  { %v137_v44 = vld [vmem:[#allocation2 + $0x8] sm:$0xff] }
 0x175   :  { %v139_v46 = vsel %vm64_vm1, %v137_v44, 0.0 }
 0x176   :  { %v140_v47 = vadd.f32 %v139_v46, %v138_v45 }
 0x178   :  { %141 = vadd.xlane.f32.xlu0 %v140_v47 }
 0x205   :  { %v142_v48 = vpop.xlane.xlu0 %141 }
 0x206   :  { %v143_v49 = vrot.slane %v142_v48, 4 }
 0x208   :  { %v144_v50 = vadd.f32 %v143_v49, %v142_v48 }
 0x20a   :  { %v145_v51 = vrot.slane %v144_v50, 2 }
 0x20c   :  { %v146_v52 = vadd.f32 %v145_v51, %v144_v50 }
 0x20e   :  { %v147_v53 = vrot.slane %v146_v52, 1 }
 0x210   :  { %v148_v54 = vadd.f32 %v147_v53, %v146_v52 }
 0x212   :  { %173 = vpush %v148_v54 }
 0x243   :  { %s174_s7 = spop %173 }
 0x244   :  { %v150_v55 = vstv %s174_s7 }
 0x245   :  { %152 = vst [vmem:[#allocation8] sm:$0xff] %v150_v55 }
 0x246   :  { %244 = shalt.err (!%p241_p6)
}
 0x247   :  { %s245_s11 = scalar_lea.hbm %s334_s2, 128 }
 0x248   :  { %p246_p7 = scmp.ne.s32.totalorder %s334_s2, %s245_s11  ;;  %p249_p8 = scmp.lt.u32.totalorder %s245_s11, %s334_s2 }
 0x24a   :  { %p251_p9 = pnand %p249_p8, %p246_p7 }
 0x24c   :  { %254 = shalt.err (!%p251_p9)
}
 0x24d   :  { %162 = dma.vmem_to_hbm [thread:$0]  %s160_s6, 128, %s334_s2, [#allocation5]  }
 0x24e   :  { %259 = dma.done.wait [#allocation5], 128  }
 0x24f   :  { %260 = vsyncadd [#allocation5], 4294967168 }
 0x250   :  { %166 = vsyncpa [#allocation4], 1 }
 0x251   :  { %167 = vsyncpa [#allocation7], 1 }
 0x252   :  { %168 = vsyncpa [#allocation5], 1 }

</bundles_post_ra>
